<compile_context>
chip_gen: v5e
topology: v5e:2x2
jax: 0.10.0
libtpu: 0.0.40
codegen_flags: <defaults>
</compile_context>

<pallas_src>
import functools

import jax
import jax.numpy as jnp
from jax.experimental import pallas as pl
from jax.experimental.pallas import tpu as pltpu


def _round_up(n: int, m: int) -> int:
    return -(-n // m) * m


def _fused_mlp_kernel(*refs, num_hidden_layers: int):
    """Entire MLP in one kernel. All refs live in VMEM.

    refs (num_hidden_layers > 0):
        x, w_in, b_in, w_h[L,Hp,Hp], b_h[L,1,Hp], w_out, b_out, out
    refs (num_hidden_layers == 0):
        x, w_in, b_in, w_out, b_out, out
    """
    if num_hidden_layers > 0:
        (x_ref, w_in_ref, b_in_ref, w_h_ref, b_h_ref,
         w_out_ref, b_out_ref, o_ref) = refs
    else:
        x_ref, w_in_ref, b_in_ref, w_out_ref, b_out_ref, o_ref = refs

    # Input layer: MXU matmul + bias + sigmoid (EUP), all on VMEM-resident data.
    y = jnp.dot(x_ref[...], w_in_ref[...], preferred_element_type=jnp.float32)
    y = jax.nn.sigmoid(y + b_in_ref[...])

    # Hidden layers: static Python loop -> fully unrolled at trace time.
    for l in range(num_hidden_layers):
        y = jnp.dot(y, w_h_ref[l], preferred_element_type=jnp.float32)
        y = jax.nn.sigmoid(y + b_h_ref[l])

    # Output layer: no activation.
    y = jnp.dot(y, w_out_ref[...], preferred_element_type=jnp.float32)
    y = y + b_out_ref[...]

    # Lane-dense store (F_out padded to 128 in the wrapper).
    o_ref[...] = y.astype(o_ref.dtype)


def fused_mlp_forward(x, padded_params, num_hidden_layers, d_in, d_out,
                      *, block_b: int = 256):
    """Run the fused MLP. Pads batch/features, dispatches one pallas_call,
    slices the result back to [B, d_out]."""
    w_in, b_in, w_h, b_h, w_out, b_out = padded_params
    B = x.shape[0]
    f_in_p = w_in.shape[0]
    f_out_p = w_out.shape[1]

    # Decide batch padding / tiling.
    if B <= block_b:
        b_pad = max(8, _round_up(B, 8))     # sublane alignment, single block
        use_grid = False
    else:
        b_pad = _round_up(B, block_b)       # grid over the batch axis
        use_grid = True

    # Zero-pad the input once (padded rows/lanes contribute nothing: the padded
    # weight rows are zero, so results in the valid region are exact).
    xp = jnp.zeros((b_pad, f_in_p), x.dtype).at[:B, :d_in].set(x)

    kernel = functools.partial(_fused_mlp_kernel,
                               num_hidden_layers=num_hidden_layers)

    args = [xp, w_in, b_in]
    if num_hidden_layers > 0:
        args += [w_h, b_h]
    args += [w_out, b_out]

    out_shape = jax.ShapeDtypeStruct((b_pad, f_out_p), x.dtype)

    if not use_grid:
        # Single invocation: whole arrays in VMEM, no grid, no pipelining.
        vmem = pl.BlockSpec(memory_space=pltpu.MemorySpace.VMEM)
        out = pl.pallas_call(
            kernel,
            out_shape=out_shape,
            in_specs=[vmem] * len(args),
            out_specs=vmem,
        )(*args)
    else:
        h_p = w_in.shape[1]
        # Batch-tiled: grid over B only; weights/biases use constant index_maps
        # so they stay VMEM-resident across grid steps; batch axis is
        # "parallel" (sharded across TensorCores on megacore parts).
        in_specs = [
            pl.BlockSpec((block_b, f_in_p), lambda i: (i, 0)),
            pl.BlockSpec((f_in_p, h_p), lambda i: (0, 0)),
            pl.BlockSpec((1, h_p), lambda i: (0, 0)),
        ]
        if num_hidden_layers > 0:
            in_specs += [
                pl.BlockSpec((num_hidden_layers, h_p, h_p),
                             lambda i: (0, 0, 0)),
                pl.BlockSpec((num_hidden_layers, 1, h_p),
                             lambda i: (0, 0, 0)),
            ]
        in_specs += [
            pl.BlockSpec((h_p, f_out_p), lambda i: (0, 0)),
            pl.BlockSpec((1, f_out_p), lambda i: (0, 0)),
        ]
        out = pl.pallas_call(
            kernel,
            out_shape=out_shape,
            grid=(b_pad // block_b,),
            in_specs=in_specs,
            out_specs=pl.BlockSpec((block_b, f_out_p), lambda i: (i, 0)),
            compiler_params=pltpu.CompilerParams(
                dimension_semantics=("parallel",)),
        )(*args)

    return out[:B, :d_out]


class LogisticRegressionPallas:
    """Deterministic-parameter re-implementation of the PyTorch module."""

    def __init__(self, D_in, H, D_out, num_hidden_layers, key):
        self.D_in, self.H, self.D_out = D_in, H, D_out
        self.num_hidden_layers = num_hidden_layers

        def init_linear(key, f_in, f_out):
            kw, kb = jax.random.split(key)
            # Match torch.nn.Linear default init: U(-1/sqrt(f_in), 1/sqrt(f_in))
            bound = 1.0 / jnp.sqrt(jnp.float32(f_in))
            w = jax.random.uniform(kw, (f_in, f_out), jnp.float32, -bound, bound)
            b = jax.random.uniform(kb, (f_out,), jnp.float32, -bound, bound)
            return w, b

        keys = jax.random.split(key, num_hidden_layers + 2)
        self.input_layer = init_linear(keys[0], D_in, H)
        self.hidden_layers = [
            init_linear(keys[1 + i], H, H) for i in range(num_hidden_layers)
        ]
        self.output_layer = init_linear(keys[-1], H, D_out)

        # ---- Pre-pad parameters ONCE to 128-lane-aligned shapes for the ----
        # ---- fused kernel (zero padding keeps the math exact).           ----
        f_in_p = _round_up(max(D_in, 1), 128)
        h_p = _round_up(max(H, 1), 128)
        f_out_p = _round_up(max(D_out, 1), 128)

        w_in, b_in = self.input_layer
        w_out, b_out = self.output_layer

        pw_in = jnp.zeros((f_in_p, h_p), jnp.float32).at[:D_in, :H].set(w_in)
        pb_in = jnp.zeros((1, h_p), jnp.float32).at[0, :H].set(b_in)
        pw_out = jnp.zeros((h_p, f_out_p), jnp.float32).at[:H, :D_out].set(w_out)
        pb_out = jnp.zeros((1, f_out_p), jnp.float32).at[0, :D_out].set(b_out)

        if num_hidden_layers > 0:
            wh = jnp.stack([w for w, _ in self.hidden_layers])   # [L, H, H]
            bh = jnp.stack([b for _, b in self.hidden_layers])   # [L, H]
            pw_h = (jnp.zeros((num_hidden_layers, h_p, h_p), jnp.float32)
                    .at[:, :H, :H].set(wh))
            pb_h = (jnp.zeros((num_hidden_layers, 1, h_p), jnp.float32)
                    .at[:, 0, :H].set(bh))
        else:
            pw_h = None
            pb_h = None

        self._padded_params = (pw_in, pb_in, pw_h, pb_h, pw_out, pb_out)

    def __call__(self, x, *, block_b: int = 256):
        return fused_mlp_forward(
            x, self._padded_params, self.num_hidden_layers,
            self.D_in, self.D_out, block_b=block_b)

    # Pure-JAX reference of the forward semantics (uses the raw, unpadded
    # parameters) — for correctness checks only.
    def reference(self, x):
        w, b = self.input_layer
        y = jax.nn.sigmoid(x @ w + b)
        for w, b in self.hidden_layers:
            y = jax.nn.sigmoid(y @ w + b)
        w, b = self.output_layer
        return y @ w + b


if __name__ == "__main__":
    key = jax.random.PRNGKey(0)
    k_params, k_x, k_x2 = jax.random.split(key, 3)

    # Shapes consistent with the module: D_in=5 (PCA n_components=5),
    # H=32, D_out=2, two hidden layers, batch=8.
    B, D_in, H, D_out, num_hidden_layers = 8, 5, 32, 2, 2

    model = LogisticRegressionPallas(D_in, H, D_out, num_hidden_layers, k_params)

    # --- small-batch path (single fused kernel, no grid) ---
    x = jax.random.normal(k_x, (B, D_in), jnp.float32)
    out = model(x)
    jax.block_until_ready(out)
    ref = model.reference(x)
    assert out.shape == (B, D_out)
    assert jnp.allclose(out, ref, atol=1e-4, rtol=1e-4)

    # --- batch-tiled path (grid over batch, weights VMEM-resident) ---
    B2 = 300
    x2 = jax.random.normal(k_x2, (B2, D_in), jnp.float32)
    out2 = model(x2, block_b=128)
    jax.block_until_ready(out2)
    ref2 = model.reference(x2)
    assert out2.shape == (B2, D_out)
    assert jnp.allclose(out2, ref2, atol=1e-4, rtol=1e-4)

    print("KERNEL_OK")
</pallas_src>

<mosaic_0001>
module attributes {stable_mosaic.version = 11 : i64} {
  func.func @_fused_mlp_kernel(%arg0: memref<8x128xf32, #tpu.memory_space<vmem>>, %arg1: memref<128x128xf32, #tpu.memory_space<vmem>>, %arg2: memref<1x128xf32, #tpu.memory_space<vmem>>, %arg3: memref<2x128x128xf32, #tpu.memory_space<vmem>>, %arg4: memref<2x1x128xf32, #tpu.memory_space<vmem>>, %arg5: memref<128x128xf32, #tpu.memory_space<vmem>>, %arg6: memref<1x128xf32, #tpu.memory_space<vmem>>, %arg7: memref<8x128xf32, #tpu.memory_space<vmem>>) attributes {dimension_semantics = [], scalar_prefetch = 0 : i64, scratch_operands = 0 : i64, tpu.core_type = #tpu.core_type<tc>} {
    %c0 = arith.constant 0 : index
    %c0_0 = arith.constant 0 : index
    %0 = vector.load %arg0[%c0, %c0_0] : memref<8x128xf32, #tpu.memory_space<vmem>>, vector<8x128xf32>
    %c0_1 = arith.constant 0 : index
    %c0_2 = arith.constant 0 : index
    %1 = vector.load %arg1[%c0_1, %c0_2] : memref<128x128xf32, #tpu.memory_space<vmem>>, vector<128x128xf32>
    %cst = arith.constant dense<0.000000e+00> : vector<8x128xf32>
    %2 = tpu.matmul %0, %1, %cst {dimension_numbers = #tpu.dot_dimension_numbers<[1], [0], [0], [1], [0, 0, 1, 1], [], []>} : vector<8x128xf32>, vector<128x128xf32>, vector<8x128xf32> -> vector<8x128xf32>
    %c0_3 = arith.constant 0 : index
    %c0_4 = arith.constant 0 : index
    %3 = vector.load %arg2[%c0_3, %c0_4] : memref<1x128xf32, #tpu.memory_space<vmem>>, vector<1x128xf32>
    %4 = vector.broadcast %3 : vector<1x128xf32> to vector<8x128xf32>
    %5 = arith.addf %2, %4 : vector<8x128xf32>
    %6 = arith.negf %5 : vector<8x128xf32>
    %7 = math.exp %6 : vector<8x128xf32>
    %cst_5 = arith.constant 1.000000e+00 : f32
    %8 = vector.broadcast %cst_5 : f32 to vector<8x128xf32>
    %9 = arith.addf %8, %7 : vector<8x128xf32>
    %10 = arith.divf %8, %9 : vector<8x128xf32>
    %c0_6 = arith.constant 0 : index
    %c0_7 = arith.constant 0 : index
    %c0_8 = arith.constant 0 : index
    %11 = vector.load %arg3[%c0_6, %c0_7, %c0_8] : memref<2x128x128xf32, #tpu.memory_space<vmem>>, vector<1x128x128xf32>
    %12 = vector.shape_cast %11 : vector<1x128x128xf32> to vector<128x128xf32>
    %cst_9 = arith.constant dense<0.000000e+00> : vector<8x128xf32>
    %13 = tpu.matmul %10, %12, %cst_9 {dimension_numbers = #tpu.dot_dimension_numbers<[1], [0], [0], [1], [0, 0, 1, 1], [], []>} : vector<8x128xf32>, vector<128x128xf32>, vector<8x128xf32> -> vector<8x128xf32>
    %c0_10 = arith.constant 0 : index
    %c0_11 = arith.constant 0 : index
    %c0_12 = arith.constant 0 : index
    %14 = vector.load %arg4[%c0_10, %c0_11, %c0_12] : memref<2x1x128xf32, #tpu.memory_space<vmem>>, vector<1x1x128xf32>
    %15 = vector.shape_cast %14 : vector<1x1x128xf32> to vector<1x128xf32>
    %16 = vector.broadcast %15 : vector<1x128xf32> to vector<8x128xf32>
    %17 = arith.addf %13, %16 : vector<8x128xf32>
    %18 = arith.negf %17 : vector<8x128xf32>
    %19 = math.exp %18 : vector<8x128xf32>
    %cst_13 = arith.constant 1.000000e+00 : f32
    %20 = vector.broadcast %cst_13 : f32 to vector<8x128xf32>
    %21 = arith.addf %20, %19 : vector<8x128xf32>
    %22 = arith.divf %20, %21 : vector<8x128xf32>
    %c1 = arith.constant 1 : index
    %c0_14 = arith.constant 0 : index
    %c0_15 = arith.constant 0 : index
    %23 = vector.load %arg3[%c1, %c0_14, %c0_15] : memref<2x128x128xf32, #tpu.memory_space<vmem>>, vector<1x128x128xf32>
    %24 = vector.shape_cast %23 : vector<1x128x128xf32> to vector<128x128xf32>
    %cst_16 = arith.constant dense<0.000000e+00> : vector<8x128xf32>
    %25 = tpu.matmul %22, %24, %cst_16 {dimension_numbers = #tpu.dot_dimension_numbers<[1], [0], [0], [1], [0, 0, 1, 1], [], []>} : vector<8x128xf32>, vector<128x128xf32>, vector<8x128xf32> -> vector<8x128xf32>
    %c1_17 = arith.constant 1 : index
    %c0_18 = arith.constant 0 : index
    %c0_19 = arith.constant 0 : index
    %26 = vector.load %arg4[%c1_17, %c0_18, %c0_19] : memref<2x1x128xf32, #tpu.memory_space<vmem>>, vector<1x1x128xf32>
    %27 = vector.shape_cast %26 : vector<1x1x128xf32> to vector<1x128xf32>
    %28 = vector.broadcast %27 : vector<1x128xf32> to vector<8x128xf32>
    %29 = arith.addf %25, %28 : vector<8x128xf32>
    %30 = arith.negf %29 : vector<8x128xf32>
    %31 = math.exp %30 : vector<8x128xf32>
    %cst_20 = arith.constant 1.000000e+00 : f32
    %32 = vector.broadcast %cst_20 : f32 to vector<8x128xf32>
    %33 = arith.addf %32, %31 : vector<8x128xf32>
    %34 = arith.divf %32, %33 : vector<8x128xf32>
    %c0_21 = arith.constant 0 : index
    %c0_22 = arith.constant 0 : index
    %35 = vector.load %arg5[%c0_21, %c0_22] : memref<128x128xf32, #tpu.memory_space<vmem>>, vector<128x128xf32>
    %cst_23 = arith.constant dense<0.000000e+00> : vector<8x128xf32>
    %36 = tpu.matmul %34, %35, %cst_23 {dimension_numbers = #tpu.dot_dimension_numbers<[1], [0], [0], [1], [0, 0, 1, 1], [], []>} : vector<8x128xf32>, vector<128x128xf32>, vector<8x128xf32> -> vector<8x128xf32>
    %c0_24 = arith.constant 0 : index
    %c0_25 = arith.constant 0 : index
    %37 = vector.load %arg6[%c0_24, %c0_25] : memref<1x128xf32, #tpu.memory_space<vmem>>, vector<1x128xf32>
    %38 = vector.broadcast %37 : vector<1x128xf32> to vector<8x128xf32>
    %39 = arith.addf %36, %38 : vector<8x128xf32>
    %c0_26 = arith.constant 0 : index
    %c0_27 = arith.constant 0 : index
    %40 = vector.load %arg7[%c0_26, %c0_27] : memref<8x128xf32, #tpu.memory_space<vmem>>, vector<8x128xf32>
    tpu.vector_store %arg7[%c0_26, %c0_27], %39 {strides = array<i32>} : memref<8x128xf32, #tpu.memory_space<vmem>>, vector<8x128xf32>,
    return
  }
}

</mosaic_0001>

<bundles_post_ra>
// kernel: tpu_custom_call.1
= control target key start
LH: loop header
LB: loop body
LE: loop exit
PB: predicated region body
PF: predicated region fallthrough
CT: control target
= control target key end

     0   :  { %12 = vsyncpa [#allocation3], 0  ;;  %s557_s0 = inlined_call_operand.hbm [shape: f32[8,128], index: 0, kind: input, shape index: {}]   ;;  %s558_s1 = inlined_call_operand.hbm [shape: f32[128,128], index: 1, kind: input, shape index: {}]   ;;  %s559_s2 = inlined_call_operand.vmem [shape: f32[1,128], index: 2, kind: input, shape index: {}]   ;;  %s560_s3 = inlined_call_operand.hbm [shape: f32[2,128,128], index: 3, kind: input, shape index: {}]   ;;  %s561_s4 = inlined_call_operand.vmem [shape: f32[2,1,128], index: 4, kind: input, shape index: {}]   ;;  %s562_s5 = inlined_call_operand.hbm [shape: f32[128,128], index: 5, kind: input, shape index: {}]   ;;  %s563_s6 = inlined_call_operand.vmem [shape: f32[1,128], index: 6, kind: input, shape index: {}]   ;;  %s564_s7 = inlined_call_operand.hbm [shape: f32[8,128], index: 7, kind: output, shape index: {}]  }
   0x1   :  { %13 = vsyncpa [#allocation6], 0 }
   0x2   :  { %14 = vsyncpa [#allocation9], 0  ;;  %s31_s26 = sshll.u32 %s558_s1, 4  ;;  %s32_s26 = int_to_ptr.hbm [resolvable:$true] %s31_s26 }
   0x3   :  { %15 = vsyncpa [#allocation4], 0  ;;  %s483_s27 = smov [#allocation5]   ;;  %s21_s8 = sshll.u32 %s557_s0, 4  ;;  %s22_s8 = int_to_ptr.hbm [resolvable:$true] %s21_s8 }
   0x4   :  { %s33_s28 = sshll.u32 %s483_s27, 4  ;;  %s484_s9 = smov 128   ;;  %s34_s28 = int_to_ptr.vmem [resolvable:$true] %s33_s28 }
   0x5   :  { %s485_s10 = smov 8   ;;  %s486_s11 = smov [#allocation2]  }
   0x6   :  { %39 = dma.hbm_to_vmem [thread:$0]  %s32_s26, 2048, %s34_s28, [#allocation6], %s484_s9, %s484_s9, %s485_s10  }
   0x7   :  { %s23_s12 = sshll.u32 %s486_s11, 4  ;;  %s46_s15 = sshll.u32 %s560_s3, 4  ;;  %s24_s12 = int_to_ptr.vmem [resolvable:$true] %s23_s12  ;;  %s47_s15 = int_to_ptr.hbm [resolvable:$true] %s46_s15 }
   0x8   :  { %26 = dma.hbm_to_vmem [thread:$0]  %s22_s8, 128, %s24_s12, [#allocation3]  }
   0x9   :  { %s61_s17 = sshll.u32 %s562_s5, 4  ;;  %s487_s18 = smov [#allocation7]   ;;  %s62_s17 = int_to_ptr.hbm [resolvable:$true] %s61_s17 }
   0xa   :  { %s48_s19 = sshll.u32 %s487_s18, 4  ;;  %s488_s0 = smov [#allocation8]   ;;  %s49_s19 = int_to_ptr.vmem [resolvable:$true] %s48_s19 }
   0xb   :  { %54 = dma.hbm_to_vmem [thread:$0]  %s47_s15, 4096, %s49_s19, [#allocation6], %s484_s9, %s484_s9, %s485_s10  }
   0xc   :  { %s63_s20 = sshll.u32 %s488_s0, 4  ;;  %s64_s20 = int_to_ptr.vmem [resolvable:$true] %s63_s20 }
   0xd   :  { %69 = dma.hbm_to_vmem [thread:$0]  %s62_s17, 2048, %s64_s20, [#allocation9], %s484_s9, %s484_s9, %s485_s10  }
   0xe   :  { %475 = dma.done.wait [#allocation3], 128  }
   0xf   :  { %476 = vsyncadd [#allocation3], 4294967168 }
  0x10   :  { %477 = dma.done.wait [#allocation6], 6144  }
  0x11   :  { %478 = vsyncadd [#allocation6], 4294961152 }
  0x12   :  { %479 = dma.done.wait [#allocation9], 2048  }
  0x13   :  { %480 = vsyncadd [#allocation9], 4294965248  ;;  %v104_v0 = vld [vmem:[#allocation5 + $0x78] sm:$0xff]  ;;  %v103_v1 = vld [vmem:[#allocation5 + $0x70] sm:$0xff]  ;;  %s489_s25 = smov [#allocation10]   ;;  %s316_s29 = sshll.u32 %s564_s7, 4  ;;  %s317_s29 = int_to_ptr.hbm [resolvable:$true] %s316_s29 }
  0x14   :  { %109 = vmatpush.msra.mxu0 %v104_v0  ;;  %v102_v2 = vld [vmem:[#allocation5 + $0x68] sm:$0xff]  ;;  %v101_v3 = vld [vmem:[#allocation5 + $0x60] sm:$0xff]  ;;  %v100_v4 = vld [vmem:[#allocation5 + $0x58] sm:$0xff]  ;;  %s314_s26 = sshll.u32 %s489_s25, 4  ;;  %s315_s26 = int_to_ptr.vmem [resolvable:$true] %s314_s26 }
  0x15   :  { %v99_v5 = vld [vmem:[#allocation5 + $0x50] sm:$0xff]  ;;  %v98_v6 = vld [vmem:[#allocation5 + $0x48] sm:$0xff]  ;;  %v97_v7 = vld [vmem:[#allocation5 + $0x40] sm:$0xff] }
  0x16   :  { %110 = vmatpush.msra.mxu0 %v103_v1  ;;  %v96_v8 = vld [vmem:[#allocation5 + $0x38] sm:$0xff]  ;;  %v95_v9 = vld [vmem:[#allocation5 + $0x30] sm:$0xff]  ;;  %v94_v10 = vld [vmem:[#allocation5 + $0x28] sm:$0xff] }
  0x17   :  { %v93_v11 = vld [vmem:[#allocation5 + $0x20] sm:$0xff]  ;;  %v92_v12 = vld [vmem:[#allocation5 + $0x18] sm:$0xff]  ;;  %v91_v13 = vld [vmem:[#allocation5 + $0x10] sm:$0xff] }
  0x18   :  { %111 = vmatpush.msra.mxu0 %v102_v2  ;;  %v90_v14 = vld [vmem:[#allocation5 + $0x8] sm:$0xff]  ;;  %v89_v15 = vld [vmem:[#allocation5] sm:$0xff]  ;;  %v88_v16 = vld [vmem:[#allocation2] sm:$0xff] }
  0x19   :  { %v163_v17 = vld [vmem:[#allocation7 + $0x78] sm:$0xff]  ;;  %v162_v18 = vld [vmem:[#allocation7 + $0x70] sm:$0xff]  ;;  %v161_v19 = vld [vmem:[#allocation7 + $0x68] sm:$0xff] }
  0x1a   :  { %112 = vmatpush.msra.mxu0 %v101_v3  ;;  %168 = vmatpush.msra.mxu1 %v163_v17  ;;  %v160_v20 = vld [vmem:[#allocation7 + $0x60] sm:$0xff]  ;;  %v159_v21 = vld [vmem:[#allocation7 + $0x58] sm:$0xff]  ;;  %v158_v22 = vld [vmem:[#allocation7 + $0x50] sm:$0xff] }
  0x1b   :  { %v157_v23 = vld [vmem:[#allocation7 + $0x48] sm:$0xff]  ;;  %v156_v24 = vld [vmem:[#allocation7 + $0x40] sm:$0xff]  ;;  %v155_v25 = vld [vmem:[#allocation7 + $0x38] sm:$0xff] }
  0x1c   :  { %113 = vmatpush.msra.mxu0 %v100_v4  ;;  %169 = vmatpush.msra.mxu1 %v162_v18  ;;  %v154_v26 = vld [vmem:[#allocation7 + $0x30] sm:$0xff]  ;;  %v153_v27 = vld [vmem:[#allocation7 + $0x28] sm:$0xff]  ;;  %v152_v28 = vld [vmem:[#allocation7 + $0x20] sm:$0xff] }
  0x1d   :  { %v151_v29 = vld [vmem:[#allocation7 + $0x18] sm:$0xff]  ;;  %v150_v30 = vld [vmem:[#allocation7 + $0x10] sm:$0xff]  ;;  %v149_v31 = vld [vmem:[#allocation7 + $0x8] sm:$0xff] }
  0x1e   :  { %114 = vmatpush.msra.mxu0 %v99_v5  ;;  %170 = vmatpush.msra.mxu1 %v161_v19  ;;  %v148_v32 = vld [vmem:[#allocation7] sm:$0xff]  ;;  %v339_v33 = vld [vmem:[%s559_s2] ss:$0 sm:$0xff]  ;;  %v222_v50 = vld [vmem:[#allocation7 + $0xf0] sm:$0xff] }
  0x1f   :  { %v223_v49 = vld [vmem:[#allocation7 + $0xf8] sm:$0xff]  ;;  %v221_v51 = vld [vmem:[#allocation7 + $0xe8] sm:$0xff]  ;;  %v220_v52 = vld [vmem:[#allocation7 + $0xe0] sm:$0xff] }
  0x20   :  { %115 = vmatpush.msra.mxu0 %v98_v6  ;;  %171 = vmatpush.msra.mxu1 %v160_v20  ;;  %v219_v53 = vld [vmem:[#allocation7 + $0xd8] sm:$0xff]  ;;  %v218_v54 = vld [vmem:[#allocation7 + $0xd0] sm:$0xff]  ;;  %v217_v55 = vld [vmem:[#allocation7 + $0xc8] sm:$0xff] }
  0x21   :  { %229 = vmatpush.msra.mxu2 %v223_v49  ;;  %v216_v56 = vld [vmem:[#allocation7 + $0xc0] sm:$0xff]  ;;  %v215_v57 = vld [vmem:[#allocation7 + $0xb8] sm:$0xff]  ;;  %v214_v58 = vld [vmem:[#allocation7 + $0xb0] sm:$0xff] }
  0x22   :  { %116 = vmatpush.msra.mxu0 %v97_v7  ;;  %172 = vmatpush.msra.mxu1 %v159_v21  ;;  %v213_v59 = vld [vmem:[#allocation7 + $0xa8] sm:$0xff]  ;;  %v212_v60 = vld [vmem:[#allocation7 + $0xa0] sm:$0xff]  ;;  %v211_v61 = vld [vmem:[#allocation7 + $0x98] sm:$0xff] }
  0x23   :  { %230 = vmatpush.msra.mxu2 %v222_v50  ;;  %v210_v62 = vld [vmem:[#allocation7 + $0x90] sm:$0xff]  ;;  %v209_v63 = vld [vmem:[#allocation7 + $0x88] sm:$0xff]  ;;  %v208_v0 = vld [vmem:[#allocation7 + $0x80] sm:$0xff] }
  0x24   :  { %117 = vmatpush.msra.mxu0 %v96_v8  ;;  %173 = vmatpush.msra.mxu1 %v158_v22  ;;  %v340_v1 = vld [vmem:[%s561_s4] ss:$0 sm:$0xff]  ;;  %v282_v18 = vld [vmem:[#allocation8 + $0x70] sm:$0xff]  ;;  %v281_v19 = vld [vmem:[#allocation8 + $0x68] sm:$0xff] }
  0x25   :  { %231 = vmatpush.msra.mxu2 %v221_v51  ;;  %v283_v17 = vld [vmem:[#allocation8 + $0x78] sm:$0xff]  ;;  %v280_v20 = vld [vmem:[#allocation8 + $0x60] sm:$0xff]  ;;  %v278_v22 = vld [vmem:[#allocation8 + $0x50] sm:$0xff] }
  0x26   :  { %118 = vmatpush.msra.mxu0 %v95_v9  ;;  %174 = vmatpush.msra.mxu1 %v157_v23  ;;  %v279_v21 = vld [vmem:[#allocation8 + $0x58] sm:$0xff]  ;;  %v277_v23 = vld [vmem:[#allocation8 + $0x48] sm:$0xff] }
  0x27   :  { %232 = vmatpush.msra.mxu2 %v220_v52  ;;  %288 = vmatpush.msra.mxu3 %v283_v17  ;;  %v342_v49 = vld [vmem:[%s563_s6] ss:$0 sm:$0xff] }
  0x28   :  { %119 = vmatpush.msra.mxu0 %v94_v10  ;;  %175 = vmatpush.msra.mxu1 %v156_v24  ;;  %v276_v24 = vld [vmem:[#allocation8 + $0x40] sm:$0xff] }
  0x29   :  { %233 = vmatpush.msra.mxu2 %v219_v53  ;;  %289 = vmatpush.msra.mxu3 %v282_v18 }
  0x2a   :  { %120 = vmatpush.msra.mxu0 %v93_v11  ;;  %176 = vmatpush.msra.mxu1 %v155_v25  ;;  %v275_v25 = vld [vmem:[#allocation8 + $0x38] sm:$0xff] }
  0x2b   :  { %234 = vmatpush.msra.mxu2 %v218_v54  ;;  %290 = vmatpush.msra.mxu3 %v281_v19 }
  0x2c   :  { %121 = vmatpush.msra.mxu0 %v92_v12  ;;  %177 = vmatpush.msra.mxu1 %v154_v26  ;;  %v274_v26 = vld [vmem:[#allocation8 + $0x30] sm:$0xff] }
  0x2d   :  { %235 = vmatpush.msra.mxu2 %v217_v55  ;;  %291 = vmatpush.msra.mxu3 %v280_v20 }
  0x2e   :  { %122 = vmatpush.msra.mxu0 %v91_v13  ;;  %178 = vmatpush.msra.mxu1 %v153_v27  ;;  %v273_v27 = vld [vmem:[#allocation8 + $0x28] sm:$0xff] }
  0x2f   :  { %236 = vmatpush.msra.mxu2 %v216_v56  ;;  %292 = vmatpush.msra.mxu3 %v279_v21 }
  0x30   :  { %123 = vmatpush.msra.mxu0 %v90_v14  ;;  %179 = vmatpush.msra.mxu1 %v152_v28  ;;  %v272_v28 = vld [vmem:[#allocation8 + $0x20] sm:$0xff] }
  0x31   :  { %237 = vmatpush.msra.mxu2 %v215_v57  ;;  %293 = vmatpush.msra.mxu3 %v278_v22 }
  0x32   :  { %124 = vmatpush.msra.mxu0 %v89_v15  ;;  %180 = vmatpush.msra.mxu1 %v151_v29  ;;  %v271_v29 = vld [vmem:[#allocation8 + $0x18] sm:$0xff] }
  0x33   :  { %125 = vmatmul.f32.vlgmr.msra.gmra.mxu0 %v88_v16  ;;  %238 = vmatpush.msra.mxu2 %v214_v58 }
  0x34   :  { %181 = vmatpush.msra.mxu1 %v150_v30  ;;  %294 = vmatpush.msra.mxu3 %v277_v23  ;;  %v270_v30 = vld [vmem:[#allocation8 + $0x10] sm:$0xff] }
  0x35   :  { %239 = vmatpush.msra.mxu2 %v213_v59 }
  0x36   :  { %182 = vmatpush.msra.mxu1 %v149_v31  ;;  %295 = vmatpush.msra.mxu3 %v276_v24  ;;  %v269_v31 = vld [vmem:[#allocation8 + $0x8] sm:$0xff] }
  0x37   :  { %240 = vmatpush.msra.mxu2 %v212_v60 }
  0x38   :  { %183 = vmatpush.msra.mxu1 %v148_v32  ;;  %296 = vmatpush.msra.mxu3 %v275_v25  ;;  %v268_v32 = vld [vmem:[#allocation8] sm:$0xff] }
  0x39   :  { %241 = vmatpush.msra.mxu2 %v211_v61 }
  0x3a   :  { %297 = vmatpush.msra.mxu3 %v274_v26 }
  0x3b   :  { %242 = vmatpush.msra.mxu2 %v210_v62 }
  0x3c   :  { %298 = vmatpush.msra.mxu3 %v273_v27 }
  0x3d   :  { %243 = vmatpush.msra.mxu2 %v209_v63 }
  0x3e   :  { %299 = vmatpush.msra.mxu3 %v272_v28 }
  0x3f   :  { %244 = vmatpush.msra.mxu2 %v208_v0 }
  0x40   :  { %300 = vmatpush.msra.mxu3 %v271_v29 }
  0x42   :  { %301 = vmatpush.msra.mxu3 %v270_v30 }
  0x44   :  { %302 = vmatpush.msra.mxu3 %v269_v31 }
  0x46   :  { %303 = vmatpush.msra.mxu3 %v268_v32 }
  0xb0   :  { %v126_v34 = vpop.f32.mrf.mxu0 }
  0xb1   :  { %v127_v35 = vadd.f32 %v339_v33, %v126_v34  ;;  %v341_v33 = vld [vmem:[%s561_s4 + $0x1] ss:$0 sm:$0xff] }
  0xb3   :  { %v328_v36 = vmul.f32 -1.442695, %v127_v35 }
  0xb5   :  { %343 = vpow2.f32 %v328_v36 }
  0xbb   :  { %v344_v37 = vpop.eup %343 }
  0xbc   :  { %v132_v38 = vadd.f32 1.0, %v344_v37 }
  0xbe   :  { %345 = vrcp.f32 %v132_v38  ;;  %v144_v42 = vand.u32 2147483648, %v132_v38  ;;  %v142_v44 = vand.u32 2147483647, %v132_v38  ;;  %vm138_vm1 = vweird.f32 %v132_v38 }
  0xc0   :  { %v145_v46 = vor.u32 1.1754944e-38, %v144_v42  ;;  %vm143_vm3 = vcmp.eq.f32.partialorder %v142_v44, 8.507059e+37 }
  0xc4   :  { %v346_v39 = vpop.eup %345 }
  0xc5   :  { %v134_v40 = vmul.f32 %v346_v39, %v132_v38  ;;  %vm139_vm0 = vweird.f32 %v346_v39 }
  0xc6   :  { %vm140_vm2 = vmor %vm138_vm1, %vm139_vm0 }
  0xc7   :  { %v135_v41 = vsub.f32 1.0, %v134_v40 }
  0xc9   :  { %v136_v43 = vmul.f32 %v346_v39, %v135_v41 }
  0xcb   :  { %v137_v45 = vadd.f32 %v346_v39, %v136_v43 }
  0xcd   :  { %v141_v47 = vsel %vm140_vm2, %v346_v39, %v137_v45 }
  0xce   :  { %v146_v48 = vsel %vm143_vm3, %v145_v46, %v141_v47 }
  0xcf   :  { %184 = vmatmul.f32.vlgmr.msra.gmra.mxu1 %v146_v48 }
 0x14c   :  { %v185_v2 = vpop.f32.mrf.mxu1 }
 0x14d   :  { %v186_v3 = vadd.f32 %v340_v1, %v185_v2 }
 0x14f   :  { %v329_v4 = vmul.f32 -1.442695, %v186_v3 }
 0x151   :  { %347 = vpow2.f32 %v329_v4 }
 0x157   :  { %v348_v5 = vpop.eup %347 }
 0x158   :  { %v191_v6 = vadd.f32 1.0, %v348_v5 }
 0x15a   :  { %349 = vrcp.f32 %v191_v6  ;;  %v203_v10 = vand.u32 2147483648, %v191_v6  ;;  %v201_v12 = vand.u32 2147483647, %v191_v6  ;;  %vm197_vm5 = vweird.f32 %v191_v6 }
 0x15c   :  { %v204_v14 = vor.u32 1.1754944e-38, %v203_v10  ;;  %vm202_vm7 = vcmp.eq.f32.partialorder %v201_v12, 8.507059e+37 }
 0x160   :  { %v350_v7 = vpop.eup %349 }
 0x161   :  { %v193_v8 = vmul.f32 %v350_v7, %v191_v6  ;;  %vm198_vm4 = vweird.f32 %v350_v7 }
 0x162   :  { %vm199_vm6 = vmor %vm197_vm5, %vm198_vm4 }
 0x163   :  { %v194_v9 = vsub.f32 1.0, %v193_v8 }
 0x165   :  { %v195_v11 = vmul.f32 %v350_v7, %v194_v9 }
 0x167   :  { %v196_v13 = vadd.f32 %v350_v7, %v195_v11 }
 0x169   :  { %v200_v15 = vsel %vm199_vm6, %v350_v7, %v196_v13 }
 0x16a   :  { %v205_v16 = vsel %vm202_vm7, %v204_v14, %v200_v15 }
 0x16b   :  { %245 = vmatmul.f32.vlgmr.msra.gmra.mxu2 %v205_v16 }
 0x1ee   :  { %v246_v34 = vpop.f32.mrf.mxu2 }
 0x1ef   :  { %v247_v35 = vadd.f32 %v341_v33, %v246_v34 }
 0x1f1   :  { %v331_v36 = vmul.f32 -1.442695, %v247_v35 }
 0x1f3   :  { %351 = vpow2.f32 %v331_v36 }
 0x1f9   :  { %v352_v37 = vpop.eup %351 }
 0x1fa   :  { %v252_v38 = vadd.f32 1.0, %v352_v37 }
 0x1fc   :  { %353 = vrcp.f32 %v252_v38  ;;  %v264_v42 = vand.u32 2147483648, %v252_v38  ;;  %v262_v44 = vand.u32 2147483647, %v252_v38  ;;  %vm258_vm9 = vweird.f32 %v252_v38 }
 0x1fe   :  { %v265_v46 = vor.u32 1.1754944e-38, %v264_v42  ;;  %vm263_vm11 = vcmp.eq.f32.partialorder %v262_v44, 8.507059e+37 }
 0x202   :  { %v354_v39 = vpop.eup %353 }
 0x203   :  { %v254_v40 = vmul.f32 %v354_v39, %v252_v38  ;;  %vm259_vm8 = vweird.f32 %v354_v39 }
 0x204   :  { %vm260_vm10 = vmor %vm258_vm9, %vm259_vm8 }
 0x205   :  { %v255_v41 = vsub.f32 1.0, %v254_v40 }
 0x207   :  { %v256_v43 = vmul.f32 %v354_v39, %v255_v41 }
 0x209   :  { %v257_v45 = vadd.f32 %v354_v39, %v256_v43 }
 0x20b   :  { %v261_v47 = vsel %vm260_vm10, %v354_v39, %v257_v45 }
 0x20c   :  { %v266_v48 = vsel %vm263_vm11, %v265_v46, %v261_v47 }
 0x20d   :  { %304 = vmatmul.f32.vlgmr.msra.gmra.mxu3 %v266_v48 }
 0x290   :  { %v305_v50 = vpop.f32.mrf.mxu3 }
 0x291   :  { %v306_v51 = vadd.f32 %v342_v49, %v305_v50 }
 0x293   :  { %308 = vst [vmem:[#allocation10] sm:$0xff] %v306_v51 }
 0x294   :  { %319 = dma.vmem_to_hbm [thread:$0]  %s315_s26, 128, %s317_s29, [#allocation4]  }
 0x295   :  { %481 = dma.done.wait [#allocation4], 128  }
 0x296   :  { %482 = vsyncadd [#allocation4], 4294967168 }
 0x297   :  { %324 = vsyncpa [#allocation3], 1 }
 0x298   :  { %325 = vsyncpa [#allocation6], 1 }
 0x299   :  { %326 = vsyncpa [#allocation9], 1 }
 0x29a   :  { %327 = vsyncpa [#allocation4], 1 }

</bundles_post_ra>
